<compile_context>
chip_gen: v6e
topology: v6e:2x2x1
jax: 0.10.0
libtpu: 0.0.40
codegen_flags: <defaults>
</compile_context>

<pallas_src>
import jax
import jax.numpy as jnp
from jax import lax
from jax.experimental import pallas as pl
from jax.experimental.pallas import tpu as pltpu

_K_PAD = 8  # conv taps (3) padded to a sublane-friendly width


def _circular_conv_embed_kernel(x_ref, w_ref, out_ref):
    # x_ref   : (TL, 8)   rows = tokens, cols = [x[l-1], x[l], x[l+1], 0, ...]
    # w_ref   : (8, D)    row k = conv tap multiplying x[l-1+k]; rows 3..7 are zero
    # out_ref : (TL, D)
    out_ref[...] = jnp.dot(
        x_ref[...], w_ref[...], preferred_element_type=jnp.float32
    ).astype(out_ref.dtype)


def _pick_row_tile(n_rows, d_model, out_itemsize,
                   target_block_bytes=4 << 20, max_rows=2048):
    """Byte-budgeted row tile: ~target_block_bytes of output per block,
    multiple of 8 (or the full row extent), preferring exact divisors of R."""
    if n_rows <= 16:
        return n_rows  # single full-extent block (always a legal block shape)
    tl = target_block_bytes // max(1, d_model * out_itemsize)
    tl = max(8, min(tl, max_rows, n_rows))
    tl -= tl % 8
    # Prefer an exact divisor of n_rows near the budget (avoids a ragged tail).
    for cand in range(tl, 7, -8):
        if n_rows % cand == 0:
            return cand
    return tl  # ragged last tile handled by the pl.cdiv grid


def d_scale_embedding(x_mark, w_conv, *, out_dtype=None, tl=None):
    """Forward pass of D_scale_Embedding.

    x_mark : (B, L, n_mark) float; only feature 0 is used (as in the module).
    w_conv : (d_model, 1, 3) Conv1d weight (OIH layout, bias-free).
    Returns (B, L, d_model) in out_dtype (default: x_mark.dtype).
    """
    B, L, _ = x_mark.shape
    D, c_in, K = w_conv.shape
    assert K == 3, "kernel_size must be 3"
    assert c_in == 1, "D_scale_Embedding.forward implies in_channels == 1"
    out_dtype = x_mark.dtype if out_dtype is None else jnp.dtype(out_dtype)

    # Circular 3-tap halo resolved per batch here (wrap never crosses tiles),
    # then B and L are flattened so tiles stay large regardless of L.  The tap
    # matrix is ~8/D of the output bytes — negligible extra HBM traffic.
    x = x_mark[:, :, 0].astype(jnp.float32)                             # (B, L)
    taps = jnp.stack([jnp.roll(x, 1, axis=1), x, jnp.roll(x, -1, axis=1)], axis=-1)
    taps = jnp.pad(taps, ((0, 0), (0, 0), (0, _K_PAD - 3)))             # (B, L, 8)
    taps = taps.reshape(B * L, _K_PAD)                                  # one input stream

    # Weight rows: w_rows[k, d] = w_conv[d, 0, k]; padded taps hit zero rows.
    w_rows = jnp.transpose(w_conv[:, 0, :]).astype(jnp.float32)         # (3, D)
    w_rows = jnp.pad(w_rows, ((0, _K_PAD - 3), (0, 0)))                 # (8, D)

    R = B * L
    if tl is None:
        tl = _pick_row_tile(R, D, out_dtype.itemsize)
    assert tl == R or tl % 8 == 0, "row tile must be a multiple of 8 (or full extent)"
    grid = (pl.cdiv(R, tl),)

    out = pl.pallas_call(
        _circular_conv_embed_kernel,
        out_shape=jax.ShapeDtypeStruct((R, D), out_dtype),
        grid=grid,
        in_specs=[
            pl.BlockSpec((tl, _K_PAD), lambda i: (i, 0)),   # stacked taps (1 DMA/step)
            pl.BlockSpec((_K_PAD, D), lambda i: (0, 0)),    # resident weights
        ],
        out_specs=pl.BlockSpec((tl, D), lambda i: (i, 0)),  # last dim = D: no post-slice
        compiler_params=pltpu.CompilerParams(
            dimension_semantics=("parallel",),
            vmem_limit_bytes=32 * 1024 * 1024,   # blocks are <= ~4 MiB, double-buffered
        ),
    )(taps, w_rows)

    return out.reshape(B, L, D)   # row-major reshape: no data movement


def reference(x_mark, w_conv):
    """Plain-JAX mirror of the PyTorch forward (circular Conv1d, no bias)."""
    x = x_mark[:, :, 0:1].astype(jnp.float32)
    x_ncl = jnp.transpose(x, (0, 2, 1))                            # (B, 1, L)
    x_pad = jnp.pad(x_ncl, ((0, 0), (0, 0), (1, 1)), mode="wrap")  # circular pad=1
    y = lax.conv_general_dilated(
        x_pad, w_conv.astype(jnp.float32), window_strides=(1,), padding="VALID",
        dimension_numbers=("NCH", "OIH", "NCH"))
    return jnp.transpose(y, (0, 2, 1))                             # (B, L, D)


if __name__ == "__main__":
    key = jax.random.PRNGKey(0)
    kx, kw, kw2 = jax.random.split(key, 3)

    # d_model NOT a multiple of 128 -> exercises the "write D directly" path
    # (ragged last lane group, no post-kernel channel slice).
    B, L, n_mark, d_model = 2, 64, 4, 96
    x_mark = jax.random.normal(kx, (B, L, n_mark), dtype=jnp.float32)
    w_conv = jax.random.normal(kw, (d_model, 1, 3), dtype=jnp.float32) * jnp.sqrt(2.0 / 3.0)

    # tl=32 -> 4 row tiles over the flattened B*L = 128 rows; exercises tiling
    # across the batch boundary and the circular wrap.
    out = jax.block_until_ready(
        d_scale_embedding(x_mark, w_conv, out_dtype=jnp.float32, tl=32))
    ref = reference(x_mark, w_conv)
    assert out.shape == (B, L, d_model)
    assert jnp.allclose(out, ref, rtol=1e-5, atol=1e-5), "f32 mismatch vs reference"

    # Auto-picked tile + lane-aligned d_model.
    d_model2 = 128
    w_conv2 = jax.random.normal(kw2, (d_model2, 1, 3), dtype=jnp.float32) * jnp.sqrt(2.0 / 3.0)
    out2 = jax.block_until_ready(d_scale_embedding(x_mark, w_conv2))
    assert jnp.allclose(out2, reference(x_mark, w_conv2), rtol=1e-5, atol=1e-5), \
        "f32 mismatch vs reference (auto tile)"

    # bf16 writeback (halves store bytes on this write-bound kernel); compute stays f32.
    out_bf16 = jax.block_until_ready(
        d_scale_embedding(x_mark, w_conv, out_dtype=jnp.bfloat16))
    assert out_bf16.dtype == jnp.bfloat16
    assert jnp.allclose(out_bf16.astype(jnp.float32), ref, rtol=5e-2, atol=5e-2), \
        "bf16 mismatch vs reference"

    print("KERNEL_OK")
</pallas_src>

<mosaic_0001>
module attributes {stable_mosaic.version = 11 : i64} {
  func.func @_circular_conv_embed_kernel(%arg0: i32, %arg1: memref<32x8xf32, #tpu.memory_space<vmem>>, %arg2: memref<8x96xf32, #tpu.memory_space<vmem>>, %arg3: memref<32x96xf32, #tpu.memory_space<vmem>>) attributes {dimension_semantics = [#tpu.dimension_semantics<parallel>], iteration_bounds = array<i64: 4>, scalar_prefetch = 0 : i64, scratch_operands = 0 : i64, tpu.core_type = #tpu.core_type<tc>, window_params = [{transform_indices = @transform_0, window_bounds = array<i64: 32, 8>}, {pipeline_mode = #tpu.pipeline_mode<synchronous>, transform_indices = @transform_1, window_bounds = array<i64: 8, 96>}, {transform_indices = @transform_2, window_bounds = array<i64: 32, 96>}]} {
    %c0 = arith.constant 0 : index
    %c0_0 = arith.constant 0 : index
    %0 = vector.load %arg1[%c0, %c0_0] : memref<32x8xf32, #tpu.memory_space<vmem>>, vector<32x8xf32>
    %c0_1 = arith.constant 0 : index
    %c0_2 = arith.constant 0 : index
    %1 = vector.load %arg2[%c0_1, %c0_2] : memref<8x96xf32, #tpu.memory_space<vmem>>, vector<8x96xf32>
    %cst = arith.constant dense<0.000000e+00> : vector<32x96xf32>
    %2 = tpu.matmul %0, %1, %cst {dimension_numbers = #tpu.dot_dimension_numbers<[1], [0], [0], [1], [0, 0, 1, 1], [], []>} : vector<32x8xf32>, vector<8x96xf32>, vector<32x96xf32> -> vector<32x96xf32>
    %c0_3 = arith.constant 0 : index
    %c0_4 = arith.constant 0 : index
    %3 = vector.load %arg3[%c0_3, %c0_4] : memref<32x96xf32, #tpu.memory_space<vmem>>, vector<32x96xf32>
    tpu.vector_store %arg3[%c0_3, %c0_4], %2 {strides = array<i32>} : memref<32x96xf32, #tpu.memory_space<vmem>>, vector<32x96xf32>,
    return
  }
  func.func @transform_0(%arg0: i32) -> (i32, i32) {
    %c0_i32 = arith.constant 0 : i32
    %c0_i32_0 = arith.constant 0 : i32
    return %arg0, %c0_i32 : i32, i32
  }
  func.func @transform_1(%arg0: i32) -> (i32, i32) {
    %c0_i32 = arith.constant 0 : i32
    %c0_i32_0 = arith.constant 0 : i32
    %c0_i32_1 = arith.constant 0 : i32
    return %c0_i32, %c0_i32_0 : i32, i32
  }
  func.func @transform_2(%arg0: i32) -> (i32, i32) {
    %c0_i32 = arith.constant 0 : i32
    %c0_i32_0 = arith.constant 0 : i32
    return %arg0, %c0_i32 : i32, i32
  }
}

</mosaic_0001>

<bundles_post_ra>
// kernel: tpu_custom_call.1
= control target key start
LH: loop header
LB: loop body
LE: loop exit
PB: predicated region body
PF: predicated region fallthrough
CT: control target
= control target key end

     0   :  { %s372_s9 = smov 0   ;;  %s392_s0 = inlined_call_operand.vmem [shape: f32[128,8], index: 0, kind: input, shape index: {}]   ;;  %s393_s1 = inlined_call_operand.vmem [shape: f32[8,96], index: 1, kind: input, shape index: {}]   ;;  %s394_s2 = inlined_call_operand.vmem [shape: f32[128,96], index: 2, kind: output, shape index: {}]  }
   0x1 LB: > { %s311_s10 = sadd.s32 4294967295, %s355_s9   ;;  %p315_p0 = scmp.ge.s32.totalorder %s355_s9, 1  ;;  %s355_s9 = sphi %s372_s9, %s12_s9  }
   0x2   : > { %p113_p1 = scmp.lt.s32.totalorder %s355_s9, 5 }
   0x4   : > { %p114_p2 = pnand %p315_p0, %p113_p1 }
   0x5   : > { %s316_s13 = sshll.u32 (!%p114_p2), %s311_s10, 2 }
   0x6   : > { %117 = sbr.rel (%p114_p2) target bundleno = 212 (0xd4), region = 28  ;;  %p136_p3 = scmp.lt.s32.totalorder (!%p114_p2), %s316_s13, 15 }
   0xb   : > { %v151_v0 = vld [vmem:[%s393_s1] sm:$0xff]  ;;  %s396_s13 = smov (!%p136_p3, %s316_s13), 15  ;;  %vm152_vm0 = vcmask 64512   ;;  %vm250_vm1 = vcmask 785408  }
   0xc   : > { %331 = vmatprep.subr.mxu0 %v151_v0  ;;  %339 = vmatprep.subr.mxu1 %v151_v0  ;;  %s317_s14 = sshll.u32 %s396_s13, 3 }
   0xd   : > { %332 = vmatpush3.msra.mxu0 %v151_v0  ;;  %340 = vmatpush3.msra.mxu1 %v151_v0  ;;  %s139_s17 = scalar_lea.vmem %s392_s0, %s317_s14  ;;  %s145_s20 = scalar_lea.vmem %s394_s2, %s317_s14 }
   0xe   : > { %v147_v1 = vld [vmem:[%s139_s17] sm:$0xff]  ;;  %v149_v2 = vld [vmem:[%s139_s17 + $0x10] sm:$0xff]  ;;  %v148_v3 = vld [vmem:[%s139_s17 + $0x8] sm:$0xff] }
   0xf   : > { %333 = vmatprep.mubr.msk.f32.mxu0 %vm152_vm0, %v147_v1  ;;  %336 = vmatprep.mubr.msk.f32.mxu1 %vm152_vm0, %v149_v2  ;;  %v150_v4 = vld [vmem:[%s139_s17 + $0x18] sm:$0xff] }
  0x10   : > { %334 = vmatmul.mubr.msk.f32.vlgmr.msra.gmra.mxu0 %vm152_vm0, %v148_v3  ;;  %337 = vmatmul.mubr.msk.f32.vlgmr.msra.gmra.mxu1 %vm152_vm0, %v150_v4 }
  0xd0   : > { %v335_v5 = vpop.f32.mrf.mxu0  ;;  %v338_v6 = vpop.f32.mrf.mxu1 }
  0xd1   : > { %252 = vst.msk [vmem:[%s145_s20 + $0x8] sm:$0xff] %vm250_vm1, %v335_v5  ;;  %254 = vst.msk [vmem:[%s145_s20 + $0x18] sm:$0xff] %vm250_vm1, %v338_v6 }
  0xd2   : > { %v231_v7 = vpop.f32.mrf.mxu0  ;;  %v241_v8 = vpop.f32.mrf.mxu1 }
  0xd3   : > { %251 = vst.msk [vmem:[%s145_s20] sm:$0xff] %vm250_vm1, %v231_v7  ;;  %253 = vst.msk [vmem:[%s145_s20 + $0x10] sm:$0xff] %vm250_vm1, %v241_v8 }
  0xd4 PF: > { %s12_s9 = sadd.s32 1, %s355_s9  }
  0xd5   : > { %p9_p4 = scmp.ge.s32.totalorder %s12_s9, 6  }
  0xd7   :  { %11 = sbr.rel (!%p9_p4) target bundleno = 1 (0x1), region = 58 }

</bundles_post_ra>
